<compile_context>
chip_gen: v6e
topology: v6e:2x2x1
jax: 0.10.0
libtpu: 0.0.40
codegen_flags: <defaults>
</compile_context>

<pallas_src>
import functools

import jax
import jax.numpy as jnp
from jax.experimental import pallas as pl
from jax.experimental.pallas import tpu as pltpu


_TARGET_TILE_BYTES = 8 * 1024 * 1024   # per feature tile (Pallas double-buffers it)
_VMEM_LIMIT_BYTES = 48 * 1024 * 1024   # > v5e 16 MiB scoped default, < v7x 64 MiB physical


# ----------------------------- kernels --------------------------------------

def _head_kernel(x_ref, w_ref, b_ref, prob_ref):
    # Inference-only head.
    # x_ref:   [TB, H] features (dropout is identity in eval mode)
    # w_ref:   [H, 1]  out_proj weight column (VMEM-resident across all tiles)
    # b_ref:   [1]     out_proj bias (SMEM scalar)
    # prob_ref:[TB, 1] sigmoid(out_proj(x))
    # TODO(synk): nn.Dropout(hidden_dropout_prob) training-mode mask is not
    # implemented (forward here matches eval mode).
    x = x_ref[...]
    w = w_ref[...].astype(x.dtype)
    logits = jnp.dot(x, w, preferred_element_type=jnp.float32) + b_ref[0]
    prob_ref[...] = jax.nn.sigmoid(logits).astype(prob_ref.dtype)


def _fused_kernel(x_ref, w_ref, b_ref, y_ref, prob_ref, loss_ref, *,
                  tile_b, n_valid, has_remainder):
    # Fused head + per-tile partial BCE sum.  loss_ref is a lane-dense (8,128)
    # block per grid step (every entry holds the same partial sum); the wrapper
    # reduces the partials, so every grid step is independent and the batch
    # axis stays "parallel" (both TensorCores on v7x).
    i = pl.program_id(0)
    x = x_ref[...]
    w = w_ref[...].astype(x.dtype)
    logits = jnp.dot(x, w, preferred_element_type=jnp.float32) + b_ref[0]  # [TB,1] f32
    prob_ref[...] = jax.nn.sigmoid(logits).astype(prob_ref.dtype)

    # BCE from logits: loss_i = softplus(z) - y*z  (numerically stable;
    # mathematically equivalent to torch BCELoss(sigmoid(z), y)).
    y = y_ref[...].astype(jnp.float32)
    softplus = jnp.maximum(logits, 0.0) + jnp.log1p(jnp.exp(-jnp.abs(logits)))
    per_row = softplus - y * logits                                    # [TB, 1]

    loss_ref[...] = jnp.zeros(loss_ref.shape, jnp.float32) + jnp.sum(per_row)

    if has_remainder:
        # Only the last tile can contain out-of-bounds (garbage) rows; the
        # masking work is skipped at runtime for all other tiles.
        @pl.when(i == pl.num_programs(0) - 1)
        def _():
            row = i * tile_b + jax.lax.broadcasted_iota(jnp.int32, per_row.shape, 0)
            masked = jnp.where(row < n_valid, per_row, 0.0)
            loss_ref[...] = jnp.zeros(loss_ref.shape, jnp.float32) + jnp.sum(masked)


# ----------------------------- tiling ----------------------------------------

def _choose_tile_b(batch, hidden, itemsize):
    """Batch tile sized by bytes (~8 MiB per feature buffer), multiple of 16."""
    rows = _TARGET_TILE_BYTES // max(1, hidden * itemsize)
    rows = max(16, (rows // 16) * 16)
    if rows >= batch:
        return batch                     # single tile; block == full array
    return rows


def _tiling(batch, hidden, itemsize, tile_b):
    if tile_b is None:
        tb = _choose_tile_b(batch, hidden, itemsize)
    else:
        tb = min(int(tile_b), batch)
    if tb < batch and tb % 8 != 0:
        raise ValueError("tile_b must be a multiple of 8 when it does not cover the batch")
    return tb, pl.cdiv(batch, tb)


# ----------------------------- wrappers -------------------------------------

def classification_head(features, w_out, b_out, *, tile_b=None):
    """prob = sigmoid(features @ w_out + b_out), streamed over batch tiles."""
    B, H = features.shape
    tb, n_tiles = _tiling(B, H, features.dtype.itemsize, tile_b)
    return pl.pallas_call(
        _head_kernel,
        out_shape=jax.ShapeDtypeStruct((B, 1), jnp.float32),
        grid_spec=pltpu.PrefetchScalarGridSpec(
            num_scalar_prefetch=0,
            grid=(n_tiles,),
            in_specs=[
                pl.BlockSpec((tb, H), lambda i: (i, 0)),             # feature tile (streamed)
                pl.BlockSpec((H, 1), lambda i: (0, 0)),              # weight column, resident
                pl.BlockSpec(memory_space=pltpu.MemorySpace.SMEM),   # bias scalar
            ],
            out_specs=pl.BlockSpec((tb, 1), lambda i: (i, 0)),
        ),
        compiler_params=pltpu.CompilerParams(
            dimension_semantics=("parallel",),
            vmem_limit_bytes=_VMEM_LIMIT_BYTES),
    )(features, w_out, b_out)


def classification_head_with_loss(features, labels, w_out, b_out, *, tile_b=None):
    """Fused prob + mean-BCE loss in a single fully parallel pallas_call."""
    B, H = features.shape
    tb, n_tiles = _tiling(B, H, features.dtype.itemsize, tile_b)
    has_rem = (B % tb) != 0
    y = labels.astype(jnp.float32).reshape(B, 1)

    kernel = functools.partial(_fused_kernel, tile_b=tb, n_valid=B,
                               has_remainder=has_rem)
    prob, loss_parts = pl.pallas_call(
        kernel,
        out_shape=(jax.ShapeDtypeStruct((B, 1), jnp.float32),
                   jax.ShapeDtypeStruct((n_tiles * 8, 128), jnp.float32)),
        grid_spec=pltpu.PrefetchScalarGridSpec(
            num_scalar_prefetch=0,
            grid=(n_tiles,),
            in_specs=[
                pl.BlockSpec((tb, H), lambda i: (i, 0)),             # feature tile
                pl.BlockSpec((H, 1), lambda i: (0, 0)),              # weight, resident
                pl.BlockSpec(memory_space=pltpu.MemorySpace.SMEM),   # bias scalar
                pl.BlockSpec((tb, 1), lambda i: (i, 0)),             # label tile
            ],
            out_specs=[
                pl.BlockSpec((tb, 1), lambda i: (i, 0)),             # prob tile
                pl.BlockSpec((8, 128), lambda i: (i, 0)),            # per-tile partial loss
            ],
        ),
        compiler_params=pltpu.CompilerParams(
            dimension_semantics=("parallel",),
            vmem_limit_bytes=_VMEM_LIMIT_BYTES),
    )(features, w_out, b_out, y)

    # Per-tile partials -> mean over the true batch (padded rows contributed 0).
    loss = loss_parts[0::8, 0].sum() / B
    return loss, prob


def model_forward(features, attn_masks, params, labels=None, *, tile_b=None):
    """Mirror of Model.forward: returns prob, or (loss, prob) if labels given.

    `attn_masks` is accepted for signature parity but unused (as in the
    original module's forward path shown)."""
    del attn_masks
    if labels is not None:
        return classification_head_with_loss(
            features, labels, params["w_out"], params["b_out"], tile_b=tile_b)
    return classification_head(
        features, params["w_out"], params["b_out"], tile_b=tile_b)


# ----------------------------- setup / reference ----------------------------

def init_params(hidden_size, key):
    """nn.Linear(hidden, 1) (`out_proj`) parameters.  The module also builds
    nn.Linear(hidden, hidden) (`dense`) which forward never uses -> skipped."""
    k_w, k_b = jax.random.split(key)
    bound = 1.0 / float(hidden_size) ** 0.5
    w_out = jax.random.uniform(k_w, (hidden_size, 1), jnp.float32, -bound, bound)
    b_out = jax.random.uniform(k_b, (1,), jnp.float32, -bound, bound)
    return {"w_out": w_out, "b_out": b_out}


def reference_forward(features, params, labels=None):
    # Pure-JAX ground truth (f32 elementwise; weight rounded to the feature
    # dtype exactly as the kernel does).
    w = params["w_out"].astype(features.dtype).astype(jnp.float32).reshape(1, -1)
    x = features.astype(jnp.float32)
    logits = jnp.sum(x * w, axis=-1, keepdims=True) + params["b_out"]
    prob = jax.nn.sigmoid(logits)
    if labels is None:
        return prob
    y = labels.astype(jnp.float32).reshape(-1, 1)
    softplus = jnp.maximum(logits, 0.0) + jnp.log1p(jnp.exp(-jnp.abs(logits)))
    return jnp.mean(softplus - y * logits), prob


# ----------------------------- demo ------------------------------------------

if __name__ == "__main__":
    key = jax.random.PRNGKey(0)
    ks = jax.random.split(key, 9)
    SEQ = 8   # only used for the (unused) attn_masks, for signature parity

    # f32 MXU matmuls may use reduced-precision passes depending on generation
    # and default precision, so f32 cases use a loose tolerance; the bf16 case
    # is comparable up to accumulation order.
    F32_TOL, BF16_TOL = 2e-2, 1e-3

    # --- case 1: f32, single tile (tile covers the whole batch) --------------
    B1, H1 = 8, 128
    params1 = init_params(H1, ks[0])
    feats1 = jax.random.normal(ks[1], (B1, H1), jnp.float32)
    labels1 = (jax.random.uniform(ks[2], (B1,)) > 0.5).astype(jnp.float32)
    attn1 = jnp.ones((B1, SEQ), jnp.float32)

    prob1 = jax.block_until_ready(model_forward(feats1, attn1, params1))
    loss1, prob1b = jax.block_until_ready(
        model_forward(feats1, attn1, params1, labels=labels1))
    prob1_ref = reference_forward(feats1, params1)
    loss1_ref, _ = reference_forward(feats1, params1, labels1)
    assert jnp.allclose(prob1, prob1_ref, atol=F32_TOL), "case1 prob mismatch"
    assert jnp.allclose(prob1b, prob1_ref, atol=F32_TOL), "case1 fused prob mismatch"
    assert jnp.allclose(loss1, loss1_ref, atol=F32_TOL), "case1 loss mismatch"

    # --- case 2: f32, multi-tile with a ragged last tile (no jnp.pad) --------
    B2, H2 = 20, 128
    params2 = init_params(H2, ks[3])
    feats2 = jax.random.normal(ks[4], (B2, H2), jnp.float32)
    labels2 = (jax.random.uniform(ks[5], (B2,)) > 0.5).astype(jnp.float32)
    loss2, prob2 = jax.block_until_ready(
        model_forward(feats2, jnp.ones((B2, SEQ), jnp.float32), params2,
                      labels=labels2, tile_b=8))   # 3 tiles; last has 4 valid rows
    loss2_ref, prob2_ref = reference_forward(feats2, params2, labels2)
    assert jnp.allclose(prob2, prob2_ref, atol=F32_TOL), "case2 prob mismatch"
    assert jnp.allclose(loss2, loss2_ref, atol=F32_TOL), "case2 loss mismatch"

    # --- case 3: bf16 feature streaming, multi-tile ---------------------------
    B3, H3 = 32, 256
    params3 = init_params(H3, ks[6])
    feats3 = jax.random.normal(ks[7], (B3, H3), jnp.float32).astype(jnp.bfloat16)
    labels3 = (jax.random.uniform(ks[8], (B3,)) > 0.5).astype(jnp.float32)
    attn3 = jnp.ones((B3, SEQ), jnp.float32)
    prob3i = jax.block_until_ready(model_forward(feats3, attn3, params3, tile_b=16))
    loss3, prob3 = jax.block_until_ready(
        model_forward(feats3, attn3, params3, labels=labels3, tile_b=16))
    loss3_ref, prob3_ref = reference_forward(feats3, params3, labels3)
    assert jnp.allclose(prob3i, prob3_ref, atol=BF16_TOL), "case3 prob mismatch"
    assert jnp.allclose(prob3, prob3_ref, atol=BF16_TOL), "case3 fused prob mismatch"
    assert jnp.allclose(loss3, loss3_ref, atol=BF16_TOL), "case3 loss mismatch"

    print("KERNEL_OK")
</pallas_src>

<mosaic_0001>
module attributes {stable_mosaic.version = 11 : i64} {
  func.func @_head_kernel(%arg0: i32, %arg1: memref<8x128xf32, #tpu.memory_space<vmem>>, %arg2: memref<128x1xf32, #tpu.memory_space<vmem>>, %arg3: memref<1xf32, #tpu.memory_space<smem>>, %arg4: memref<8x1xf32, #tpu.memory_space<vmem>>) attributes {dimension_semantics = [#tpu.dimension_semantics<parallel>], iteration_bounds = array<i64: 1>, scalar_prefetch = 0 : i64, scratch_operands = 0 : i64, tpu.core_type = #tpu.core_type<tc>, window_params = [{transform_indices = @transform_0, window_bounds = array<i64: 8, 128>}, {pipeline_mode = #tpu.pipeline_mode<synchronous>, transform_indices = @transform_1, window_bounds = array<i64: 128, 1>}, {transform_indices = @transform_2, window_bounds = array<i64: 1>}, {transform_indices = @transform_3, window_bounds = array<i64: 8, 1>}]} {
    %c0 = arith.constant 0 : index
    %c0_0 = arith.constant 0 : index
    %0 = vector.load %arg1[%c0, %c0_0] : memref<8x128xf32, #tpu.memory_space<vmem>>, vector<8x128xf32>
    %c0_1 = arith.constant 0 : index
    %c0_2 = arith.constant 0 : index
    %1 = vector.load %arg2[%c0_1, %c0_2] : memref<128x1xf32, #tpu.memory_space<vmem>>, vector<128x1xf32>
    %cst = arith.constant dense<0.000000e+00> : vector<8x1xf32>
    %2 = tpu.matmul %0, %1, %cst {dimension_numbers = #tpu.dot_dimension_numbers<[1], [0], [0], [1], [0, 0, 1, 1], [], []>} : vector<8x128xf32>, vector<128x1xf32>, vector<8x1xf32> -> vector<8x1xf32>
    %c0_3 = arith.constant 0 : index
    %3 = memref.load %arg3[%c0_3] : memref<1xf32, #tpu.memory_space<smem>>
    %4 = vector.broadcast %3 : f32 to vector<8x1xf32>
    %5 = arith.addf %2, %4 : vector<8x1xf32>
    %6 = arith.negf %5 : vector<8x1xf32>
    %7 = math.exp %6 : vector<8x1xf32>
    %cst_4 = arith.constant 1.000000e+00 : f32
    %8 = vector.broadcast %cst_4 : f32 to vector<8x1xf32>
    %9 = arith.addf %8, %7 : vector<8x1xf32>
    %10 = arith.divf %8, %9 : vector<8x1xf32>
    %c0_5 = arith.constant 0 : index
    %c0_6 = arith.constant 0 : index
    %11 = vector.load %arg4[%c0_5, %c0_6] : memref<8x1xf32, #tpu.memory_space<vmem>>, vector<8x1xf32>
    tpu.vector_store %arg4[%c0_5, %c0_6], %10 {strides = array<i32>} : memref<8x1xf32, #tpu.memory_space<vmem>>, vector<8x1xf32>,
    return
  }
  func.func @transform_0(%arg0: i32) -> (i32, i32) {
    %c0_i32 = arith.constant 0 : i32
    %c0_i32_0 = arith.constant 0 : i32
    return %arg0, %c0_i32 : i32, i32
  }
  func.func @transform_1(%arg0: i32) -> (i32, i32) {
    %c0_i32 = arith.constant 0 : i32
    %c0_i32_0 = arith.constant 0 : i32
    %c0_i32_1 = arith.constant 0 : i32
    return %c0_i32, %c0_i32_0 : i32, i32
  }
  func.func @transform_2(%arg0: i32) -> i32 {
    %c0_i32 = arith.constant 0 : i32
    %c0_i32_0 = arith.constant 0 : i32
    return %c0_i32 : i32
  }
  func.func @transform_3(%arg0: i32) -> (i32, i32) {
    %c0_i32 = arith.constant 0 : i32
    %c0_i32_0 = arith.constant 0 : i32
    return %arg0, %c0_i32 : i32, i32
  }
}

</mosaic_0001>

<bundles_post_ra>
// kernel: tpu_custom_call.1
= control target key start
LH: loop header
LB: loop body
LE: loop exit
PB: predicated region body
PF: predicated region fallthrough
CT: control target
= control target key end

     0   :  { %v175_v0 = vmov 0.0   ;;  %vm176_vm0 = vmmov 0   ;;  %vm110_vm1 = vcmask 7168   ;;  %s254_s1 = inlined_call_operand.vmem [shape: f32[128,1], index: 1, kind: input, shape index: {}]   ;;  %s255_s0 = inlined_call_operand.vmem [shape: f32[8,128], index: 0, kind: input, shape index: {}]   ;;  %s256_s2 = inlined_call_operand.<no memory space> [shape: f32[1], index: 2, kind: input, shape index: {}]   ;;  %s257_s3 = inlined_call_operand.vmem [shape: f32[8,1], index: 3, kind: output, shape index: {}]  }
   0x1   :  { %134 = vmatprep.subr.mxu0 %v175_v0  ;;  %v31_v1 = vld [vmem:[%s254_s1 + $0x78] sm:$0xff]  ;;  %v30_v2 = vld [vmem:[%s254_s1 + $0x70] sm:$0xff]  ;;  %166 = vmatprep.mubr.msk.f32.mxu0 %vm176_vm0, %v175_v0  ;;  %v29_v3 = vld [vmem:[%s254_s1 + $0x68] sm:$0xff]  ;;  %v33_v18 = vstv %s256_s2 }
   0x2   :  { %135 = vmatpush3.msra.mxu0 %v31_v1  ;;  %v28_v4 = vld [vmem:[%s254_s1 + $0x60] sm:$0xff]  ;;  %v27_v5 = vld [vmem:[%s254_s1 + $0x58] sm:$0xff]  ;;  %v26_v6 = vld [vmem:[%s254_s1 + $0x50] sm:$0xff] }
   0x3   :  { %136 = vmatprep.subr.mxu0 %v175_v0  ;;  %v25_v7 = vld [vmem:[%s254_s1 + $0x48] sm:$0xff]  ;;  %v24_v8 = vld [vmem:[%s254_s1 + $0x40] sm:$0xff]  ;;  %v23_v9 = vld [vmem:[%s254_s1 + $0x38] sm:$0xff] }
   0x4   :  { %137 = vmatpush3.msra.mxu0 %v30_v2  ;;  %v22_v10 = vld [vmem:[%s254_s1 + $0x30] sm:$0xff]  ;;  %v21_v11 = vld [vmem:[%s254_s1 + $0x28] sm:$0xff]  ;;  %v20_v12 = vld [vmem:[%s254_s1 + $0x20] sm:$0xff] }
   0x5   :  { %138 = vmatprep.subr.mxu0 %v175_v0  ;;  %v19_v13 = vld [vmem:[%s254_s1 + $0x18] sm:$0xff]  ;;  %v18_v14 = vld [vmem:[%s254_s1 + $0x10] sm:$0xff]  ;;  %v17_v15 = vld [vmem:[%s254_s1 + $0x8] sm:$0xff] }
   0x6   :  { %139 = vmatpush3.msra.mxu0 %v29_v3  ;;  %v16_v16 = vld [vmem:[%s254_s1] sm:$0xff] }
   0x7   :  { %140 = vmatprep.subr.mxu0 %v175_v0  ;;  %v15_v17 = vld [vmem:[%s255_s0] sm:$0xff] }
   0x8   :  { %141 = vmatpush3.msra.mxu0 %v28_v4 }
   0x9   :  { %142 = vmatprep.subr.mxu0 %v175_v0 }
   0xa   :  { %143 = vmatpush3.msra.mxu0 %v27_v5 }
   0xb   :  { %144 = vmatprep.subr.mxu0 %v175_v0 }
   0xc   :  { %145 = vmatpush3.msra.mxu0 %v26_v6 }
   0xd   :  { %146 = vmatprep.subr.mxu0 %v175_v0 }
   0xe   :  { %147 = vmatpush3.msra.mxu0 %v25_v7 }
   0xf   :  { %148 = vmatprep.subr.mxu0 %v175_v0 }
  0x10   :  { %149 = vmatpush3.msra.mxu0 %v24_v8 }
  0x11   :  { %150 = vmatprep.subr.mxu0 %v175_v0 }
  0x12   :  { %151 = vmatpush3.msra.mxu0 %v23_v9 }
  0x13   :  { %152 = vmatprep.subr.mxu0 %v175_v0 }
  0x14   :  { %153 = vmatpush3.msra.mxu0 %v22_v10 }
  0x15   :  { %154 = vmatprep.subr.mxu0 %v175_v0 }
  0x16   :  { %155 = vmatpush3.msra.mxu0 %v21_v11 }
  0x17   :  { %156 = vmatprep.subr.mxu0 %v175_v0 }
  0x18   :  { %157 = vmatpush3.msra.mxu0 %v20_v12 }
  0x19   :  { %158 = vmatprep.subr.mxu0 %v175_v0 }
  0x1a   :  { %159 = vmatpush3.msra.mxu0 %v19_v13 }
  0x1b   :  { %160 = vmatprep.subr.mxu0 %v175_v0 }
  0x1c   :  { %161 = vmatpush3.msra.mxu0 %v18_v14 }
  0x1d   :  { %162 = vmatprep.subr.mxu0 %v175_v0 }
  0x1e   :  { %163 = vmatpush3.msra.mxu0 %v17_v15 }
  0x1f   :  { %164 = vmatprep.subr.mxu0 %v175_v0 }
  0x20   :  { %165 = vmatpush3.msra.mxu0 %v16_v16 }
  0x21   :  { %167 = vmatmul.mubr.f32.vlgmr.msra.gmra.mxu0 %v15_v17 }
  0xe1   :  { %v100_v19 = vpop.f32.mrf.mxu0 }
  0xe2   :  { %v101_v20 = vadd.f32 %v100_v19, %v33_v18 }
  0xe3   :  { %v168_v21 = vpop.f32.mrf.mxu0 }
  0xe4   :  { %v116_v22 = vmul.f32 -1.442695, %v101_v20 }
  0xe6   :  { %171 = vpow2.f32 %v116_v22 }
  0xf3   :  { %v172_v23 = vpop.eup %171 }
  0xf4   :  { %v107_v24 = vadd.f32 1.0, %v172_v23 }
  0xf6   :  { %173 = vrcp.f32 %v107_v24 }
 0x103   :  { %v174_v25 = vpop.eup %173 }
 0x104   :  { %111 = vst.msk [vmem:[%s257_s3] sm:$0xff] %vm110_vm1, %v174_v25 }

</bundles_post_ra>
